<compile_context>
chip_gen: v5e
topology: v5e:2x2
jax: 0.10.0
libtpu: 0.0.40
codegen_flags: <defaults>
</compile_context>

<pallas_src>
import jax
import jax.numpy as jnp
from jax.experimental import pallas as pl
from jax.experimental.pallas import tpu as pltpu


def _round_up(n, m):
    return ((n + m - 1) // m) * m


def _choose_tile(n, pref, align):
    """Largest tile (multiple of `align`, <= pref) whose padding waste is small."""
    n_al = _round_up(n, align)
    if n_al <= pref:
        return n_al
    t = (pref // align) * align
    while t > align:
        waste = _round_up(n_al, t) - n_al
        if waste * 8 <= n_al:          # <= ~12.5% padded work
            return t
        t -= align
    return align                        # always 0 waste (n_al is a multiple of align)


def rbf_kernel(x_ref, ct_ref, cnh_ref, n2b_ref, o_ref):
    x = x_ref[...]                                                    # (TB, F)
    xnorm_h = 0.5 * jnp.sum(x * x, axis=-1, keepdims=True)            # (TB, 1)
    # MXU cross term: x @ centers^T, pre-transposed RHS, f32 accumulation.
    cross = jnp.dot(x, ct_ref[...], preferred_element_type=jnp.float32)  # (TB, TO)
    t = (xnorm_h + cnh_ref[...]) - cross                              # (TB, TO)
    # neg2beta <= 0, so min(neg2beta * t, 0) == -beta * max(d2, 0): guards the
    # catastrophic-cancellation case (x ~= c) without an extra clamp op.
    o_ref[...] = jnp.exp(jnp.minimum(n2b_ref[...] * t, 0.0)).astype(o_ref.dtype)


def rbf_forward(x, centers, log_beta, *, tb=512, to=512):
    """x: (B, F), centers: (O, F), log_beta: (O,) -> (B, O)."""
    B, F = x.shape
    O, F2 = centers.shape
    assert F == F2

    # Adaptive, lane-dense tiles: TO multiple of 128, TB multiple of 8, with
    # padding waste kept small for awkward B / O.
    TB = _choose_tile(B, tb, 8)
    TO = _choose_tile(O, to, 128)
    B_pad = _round_up(B, TB)
    O_pad = _round_up(O, TO)

    f32 = jnp.float32
    x_p = x if B_pad == B else jnp.pad(x, ((0, B_pad - B), (0, 0)))

    # Wrapper-side (one-time, O(O*F)) precompute: transposed centers,
    # half-center-norms, and -2*softplus(log_beta). Padded columns are zeros
    # -> neg2beta = 0 -> exp(0) = 1 in padded output columns (sliced off).
    c32 = centers.astype(f32)
    ct = c32.T                                                        # (F, O)
    cnh = (0.5 * jnp.sum(c32 * c32, axis=-1)).reshape(1, O)           # (1, O)
    n2b = (-2.0 * jax.nn.softplus(log_beta.astype(f32))).reshape(1, O)
    if O_pad != O:
        ct = jnp.pad(ct, ((0, 0), (0, O_pad - O)))
        cnh = jnp.pad(cnh, ((0, 0), (0, O_pad - O)))
        n2b = jnp.pad(n2b, ((0, 0), (0, O_pad - O)))
    ct = ct.astype(x.dtype)

    grid = (O_pad // TO, B_pad // TB)

    # VMEM budget derived from the actual (double-buffered) block sizes; stays
    # well within v7x's 64 MiB/TC while giving the compiler headroom.
    block_bytes = 4 * (TB * F + F * TO + 2 * TO + TB * TO)
    vmem_limit = int(min(max(4 * block_bytes + (4 << 20), 8 << 20), 40 << 20))

    cost = pl.CostEstimate(
        flops=2 * B_pad * O_pad * F,
        transcendentals=B_pad * O_pad,
        bytes_accessed=4 * (B_pad * F * (O_pad // TO) + F * O_pad
                            + 2 * O_pad + B_pad * O_pad),
    )

    out = pl.pallas_call(
        rbf_kernel,
        out_shape=jax.ShapeDtypeStruct((B_pad, O_pad), x.dtype),
        grid_spec=pltpu.PrefetchScalarGridSpec(
            num_scalar_prefetch=0,
            grid=grid,
            in_specs=[
                pl.BlockSpec((TB, F), lambda j, i: (i, 0)),   # x
                pl.BlockSpec((F, TO), lambda j, i: (0, j)),   # centers^T (pre-transposed)
                pl.BlockSpec((1, TO), lambda j, i: (0, j)),   # 0.5*||c||^2
                pl.BlockSpec((1, TO), lambda j, i: (0, j)),   # -2*softplus(log_beta)
            ],
            out_specs=pl.BlockSpec((TB, TO), lambda j, i: (i, j)),
        ),
        compiler_params=pltpu.CompilerParams(
            # No cross-iteration state -> both axes independent (megacore on v7x).
            dimension_semantics=("parallel", "parallel"),
            vmem_limit_bytes=vmem_limit,
        ),
        cost_estimate=cost,
    )(x_p, ct, cnh, n2b)

    return out[:B, :O]


def rbf_reference(x, centers, log_beta):
    beta = jax.nn.softplus(log_beta)
    diff = x[:, None, :] - centers[None, :, :]
    d2 = jnp.sum(diff * diff, axis=-1)
    return jnp.exp(-beta[None, :] * d2)


if __name__ == "__main__":
    key = jax.random.PRNGKey(0)
    k_x, k_c = jax.random.split(key)

    batch = 8
    in_features = 32
    out_features = 16

    # deterministic "parameters" (mirror nn.init.uniform_(-1, 1) and
    # log_beta = log(18.2) * ones)
    centers = jax.random.uniform(
        k_c, (out_features, in_features), minval=-1.0, maxval=1.0,
        dtype=jnp.float32)
    log_beta = jnp.full((out_features,), jnp.log(18.2), dtype=jnp.float32)

    # example input
    x = jax.random.normal(k_x, (batch, in_features), dtype=jnp.float32)

    out = rbf_forward(x, centers, log_beta)
    out = jax.block_until_ready(out)

    ref = rbf_reference(x, centers, log_beta)
    assert out.shape == (batch, out_features)
    assert jnp.allclose(out, ref, atol=1e-4, rtol=1e-4), (
        float(jnp.max(jnp.abs(out - ref))))

    print("KERNEL_OK")
</pallas_src>

<mosaic_0001>
module attributes {stable_mosaic.version = 11 : i64} {
  func.func @rbf_kernel(%arg0: i32, %arg1: i32, %arg2: memref<8x32xf32, #tpu.memory_space<vmem>>, %arg3: memref<32x128xf32, #tpu.memory_space<vmem>>, %arg4: memref<1x128xf32, #tpu.memory_space<vmem>>, %arg5: memref<1x128xf32, #tpu.memory_space<vmem>>, %arg6: memref<8x128xf32, #tpu.memory_space<vmem>>) attributes {dimension_semantics = [#tpu.dimension_semantics<parallel>, #tpu.dimension_semantics<parallel>], iteration_bounds = array<i64: 1, 1>, scalar_prefetch = 0 : i64, scratch_operands = 0 : i64, tpu.core_type = #tpu.core_type<tc>, window_params = [{transform_indices = @transform_0, window_bounds = array<i64: 8, 32>}, {transform_indices = @transform_1, window_bounds = array<i64: 32, 128>}, {transform_indices = @transform_2, window_bounds = array<i64: 1, 128>}, {transform_indices = @transform_3, window_bounds = array<i64: 1, 128>}, {transform_indices = @transform_4, window_bounds = array<i64: 8, 128>}]} {
    %c0 = arith.constant 0 : index
    %c0_0 = arith.constant 0 : index
    %0 = vector.load %arg2[%c0, %c0_0] : memref<8x32xf32, #tpu.memory_space<vmem>>, vector<8x32xf32>
    %1 = arith.mulf %0, %0 : vector<8x32xf32>
    %cst = arith.constant dense<0.000000e+00> : vector<8xf32>
    %2 = vector.multi_reduction <add>, %1, %cst [1] : vector<8x32xf32> to vector<8xf32>
    %3 = vector.shape_cast %2 : vector<8xf32> to vector<8x1xf32>
    %cst_1 = arith.constant 5.000000e-01 : f32
    %4 = vector.broadcast %cst_1 : f32 to vector<8x1xf32>
    %5 = arith.mulf %4, %3 : vector<8x1xf32>
    %c0_2 = arith.constant 0 : index
    %c0_3 = arith.constant 0 : index
    %6 = vector.load %arg3[%c0_2, %c0_3] : memref<32x128xf32, #tpu.memory_space<vmem>>, vector<32x128xf32>
    %cst_4 = arith.constant dense<0.000000e+00> : vector<8x128xf32>
    %7 = tpu.matmul %0, %6, %cst_4 {dimension_numbers = #tpu.dot_dimension_numbers<[1], [0], [0], [1], [0, 0, 1, 1], [], []>} : vector<8x32xf32>, vector<32x128xf32>, vector<8x128xf32> -> vector<8x128xf32>
    %c0_5 = arith.constant 0 : index
    %c0_6 = arith.constant 0 : index
    %8 = vector.load %arg4[%c0_5, %c0_6] : memref<1x128xf32, #tpu.memory_space<vmem>>, vector<1x128xf32>
    %9 = vector.broadcast %5 : vector<8x1xf32> to vector<8x128xf32>
    %10 = vector.broadcast %8 : vector<1x128xf32> to vector<8x128xf32>
    %11 = arith.addf %9, %10 : vector<8x128xf32>
    %12 = arith.subf %11, %7 : vector<8x128xf32>
    %c0_7 = arith.constant 0 : index
    %c0_8 = arith.constant 0 : index
    %13 = vector.load %arg5[%c0_7, %c0_8] : memref<1x128xf32, #tpu.memory_space<vmem>>, vector<1x128xf32>
    %14 = vector.broadcast %13 : vector<1x128xf32> to vector<8x128xf32>
    %15 = arith.mulf %14, %12 : vector<8x128xf32>
    %cst_9 = arith.constant 0.000000e+00 : f32
    %16 = vector.broadcast %cst_9 : f32 to vector<8x128xf32>
    %17 = arith.minimumf %15, %16 : vector<8x128xf32>
    %18 = math.exp %17 : vector<8x128xf32>
    %c0_10 = arith.constant 0 : index
    %c0_11 = arith.constant 0 : index
    %19 = vector.load %arg6[%c0_10, %c0_11] : memref<8x128xf32, #tpu.memory_space<vmem>>, vector<8x128xf32>
    tpu.vector_store %arg6[%c0_10, %c0_11], %18 {strides = array<i32>} : memref<8x128xf32, #tpu.memory_space<vmem>>, vector<8x128xf32>,
    return
  }
  func.func @transform_0(%arg0: i32, %arg1: i32) -> (i32, i32) {
    %c0_i32 = arith.constant 0 : i32
    %c0_i32_0 = arith.constant 0 : i32
    return %arg1, %c0_i32 : i32, i32
  }
  func.func @transform_1(%arg0: i32, %arg1: i32) -> (i32, i32) {
    %c0_i32 = arith.constant 0 : i32
    %c0_i32_0 = arith.constant 0 : i32
    return %c0_i32, %arg0 : i32, i32
  }
  func.func @transform_2(%arg0: i32, %arg1: i32) -> (i32, i32) {
    %c0_i32 = arith.constant 0 : i32
    %c0_i32_0 = arith.constant 0 : i32
    return %c0_i32, %arg0 : i32, i32
  }
  func.func @transform_3(%arg0: i32, %arg1: i32) -> (i32, i32) {
    %c0_i32 = arith.constant 0 : i32
    %c0_i32_0 = arith.constant 0 : i32
    return %c0_i32, %arg0 : i32, i32
  }
  func.func @transform_4(%arg0: i32, %arg1: i32) -> (i32, i32) {
    %c0_i32 = arith.constant 0 : i32
    return %arg1, %arg0 : i32, i32
  }
}

</mosaic_0001>

<bundles_post_ra>
// kernel: tpu_custom_call.1
= control target key start
LH: loop header
LB: loop body
LE: loop exit
PB: predicated region body
PF: predicated region fallthrough
CT: control target
= control target key end

     0   :  { %9 = vsyncpa [#allocation3], 0  ;;  %s248_s0 = inlined_call_operand.hbm [shape: f32[8,32], index: 0, kind: input, shape index: {}]   ;;  %s249_s1 = inlined_call_operand.hbm [shape: f32[32,128], index: 1, kind: input, shape index: {}]   ;;  %s250_s2 = inlined_call_operand.vmem [shape: f32[1,128], index: 2, kind: input, shape index: {}]   ;;  %s251_s3 = inlined_call_operand.vmem [shape: f32[1,128], index: 3, kind: input, shape index: {}]   ;;  %s252_s4 = inlined_call_operand.hbm [shape: f32[8,128], index: 4, kind: output, shape index: {}]  }
   0x1   :  { %10 = vsyncpa [#allocation6], 0 }
   0x2   :  { %11 = vsyncpa [#allocation4], 0  ;;  %s17_s17 = sshll.u32 %s248_s0, 4  ;;  %s203_s18 = smov [#allocation2]   ;;  %s18_s17 = int_to_ptr.hbm [resolvable:$true] %s17_s17 }
   0x3   :  { %s19_s19 = sshll.u32 %s203_s18, 4  ;;  %s27_s22 = sshll.u32 %s249_s1, 4  ;;  %s20_s19 = int_to_ptr.vmem [resolvable:$true] %s19_s19  ;;  %s28_s22 = int_to_ptr.hbm [resolvable:$true] %s27_s22 }
   0x4   :  { %22 = dma.hbm_to_vmem [thread:$0]  %s18_s17, 128, %s20_s19, [#allocation3]  }
   0x5   :  { %s204_s23 = smov [#allocation5]   ;;  %s205_s25 = smov 128  }
   0x6   :  { %s29_s24 = sshll.u32 %s204_s23, 4  ;;  %s206_s26 = smov 8   ;;  %s30_s24 = int_to_ptr.vmem [resolvable:$true] %s29_s24 }
   0x7   :  { %35 = dma.hbm_to_vmem [thread:$0]  %s28_s22, 512, %s30_s24, [#allocation6], %s205_s25, %s205_s25, %s206_s26  }
   0x8   :  { %197 = dma.done.wait [#allocation3], 128  }
   0x9   :  { %198 = vsyncadd [#allocation3], 4294967168 }
   0xa   :  { %199 = dma.done.wait [#allocation6], 512  }
   0xb   :  { %200 = vsyncadd [#allocation6], 4294966784  ;;  %v58_v0 = vld [vmem:[#allocation5 + $0x18] sm:$0xff]  ;;  %v57_v1 = vld [vmem:[#allocation5 + $0x10] sm:$0xff]  ;;  %vm50_vm0 = vcmask 261120   ;;  %s207_s29 = smov [#allocation7]  }
   0xc   :  { %74 = vmatpush.msra.mxu0 %v58_v0  ;;  %v48_v2 = vld [vmem:[#allocation2] sm:$0xff]  ;;  %v56_v3 = vld [vmem:[#allocation5 + $0x8] sm:$0xff]  ;;  %v55_v5 = vld [vmem:[#allocation5] sm:$0xff]  ;;  %s102_s30 = sshll.u32 %s207_s29, 4  ;;  %s104_s7 = sshll.u32 %s252_s4, 4  ;;  %s103_s30 = int_to_ptr.vmem [resolvable:$true] %s102_s30  ;;  %s105_s7 = int_to_ptr.hbm [resolvable:$true] %s104_s7 }
   0xd   :  { %v49_v4 = vmul.f32 %v48_v2, %v48_v2  ;;  %v121_v9 = vld [vmem:[%s250_s2] ss:$0 sm:$0xff] }
   0xe   :  { %75 = vmatpush.msra.mxu0 %v57_v1  ;;  %v122_v11 = vld [vmem:[%s251_s3] ss:$0 sm:$0xff] }
   0xf   :  { %v51_v6 = vsel %vm50_vm0, %v49_v4, 0.0 }
  0x10   :  { %76 = vmatpush.msra.mxu0 %v56_v3  ;;  %52 = vadd.xlane.f32.xlu0 %v51_v6 }
  0x12   :  { %77 = vmatpush.msra.mxu0 %v55_v5 }
  0x13   :  { %115 = vmatmul.msk.f32.vlgmr.msra.gmra.mxu0 %vm50_vm0, %v48_v2 }
  0x83   :  { %v53_v7 = vpop.xlane.xlu0 %52 }
  0x84   :  { %v54_v8 = vmul.f32 0.5, %v53_v7 }
  0x86   :  { %v86_v10 = vadd.f32 %v121_v9, %v54_v8 }
  0x90   :  { %v79_v12 = vpop.f32.mrf.mxu0 }
  0x91   :  { %v87_v13 = vsub.f32 %v86_v10, %v79_v12 }
  0x93   :  { %v92_v14 = vmul.f32 %v122_v11, %v87_v13 }
  0x95   :  { %v93_v15 = vmin.f32 %v92_v14, 0.0 }
  0x97   :  { %v94_v16 = vmul.f32 1.442695, %v93_v15 }
  0x99   :  { %123 = vpow2.f32 %v94_v16 }
  0x9f   :  { %v124_v17 = vpop.eup %123 }
  0xa0   :  { %96 = vst [vmem:[#allocation7] sm:$0xff] %v124_v17 }
  0xa1   :  { %107 = dma.vmem_to_hbm [thread:$0]  %s103_s30, 128, %s105_s7, [#allocation4]  }
  0xa2   :  { %201 = dma.done.wait [#allocation4], 128  }
  0xa3   :  { %202 = vsyncadd [#allocation4], 4294967168 }
  0xa4   :  { %112 = vsyncpa [#allocation3], 1 }
  0xa5   :  { %113 = vsyncpa [#allocation6], 1 }
  0xa6   :  { %114 = vsyncpa [#allocation4], 1 }

</bundles_post_ra>
